<compile_context>
chip_gen: v7x
topology: tpu7x:2x2x1
jax: 0.10.0
libtpu: 0.0.40
codegen_flags: <defaults>
</compile_context>

<pallas_src>
import functools

import jax
import jax.numpy as jnp
from jax.experimental import pallas as pl
from jax.experimental.pallas import tpu as pltpu

SQRT_HALF = 0.7071067811865476  # torch.sqrt(torch.FloatTensor([0.5]))


def _cnn_kernel(x_ref, wfc_ref, bfc_ref, wconv_ref, bconv_ref, out_ref, h_ref,
                *, n_layers, kernel_size, seq_len, hid_dim, batch_tile):
    """Grid = (batch blocks, layers). One GLU-conv layer per grid step.

    x_ref:     (batch_tile*L, P)      flattened protein rows for this block
    wfc_ref:   (P, H)    bfc_ref: (1, H)
    wconv_ref: (1, K*H, 2H)           this layer's im2col conv weight
    bconv_ref: (1, 1, 2H)             this layer's conv bias (a | gate)
    out_ref:   (batch_tile, 1, H)     max-pooled output (written on last layer)
    h_ref:     VMEM scratch (batch_tile*L, H)  — activation carried across layers
    """
    L, H, K = seq_len, hid_dim, kernel_size
    pad = (K - 1) // 2
    M = batch_tile * L
    layer = pl.program_id(1)

    # Layer 0: fc (Linear protein_dim -> hid_dim) into the carried activation.
    @pl.when(layer == 0)
    def _():
        h_ref[...] = (
            jnp.dot(x_ref[...], wfc_ref[...], preferred_element_type=jnp.float32)
            + bfc_ref[...]
        )

    h = h_ref[...]                                               # (M, H)

    # Build the im2col activation (M, K*H).  Tap k reads h[row - (pad - k)];
    # rows outside the current sequence (Conv1d zero padding) are masked.
    pos = jax.lax.broadcasted_iota(jnp.int32, (M, H), 0) % L     # position in sequence
    cols = []
    for k in range(K):
        shift = pad - k                                          # source row = row - shift
        tap = h if (shift % M) == 0 else pltpu.roll(h, shift=shift % M, axis=0)
        if shift != 0:
            src = pos - shift
            tap = jnp.where((src >= 0) & (src < L), tap, 0.0)
        cols.append(tap)
    tap_mat = jnp.concatenate(cols, axis=1)                      # (M, K*H)

    # Single fused matmul for all K taps and both GLU halves.
    conv = (
        jnp.dot(tap_mat, wconv_ref[0], preferred_element_type=jnp.float32)
        + bconv_ref[0]
    )                                                            # (M, 2H)
    a = conv[:, :H]
    g = conv[:, H:]
    h_new = (a * jax.nn.sigmoid(g) + h) * jnp.float32(SQRT_HALF)
    h_ref[...] = h_new

    # Last layer: max-pool over the length axis of each sequence.
    @pl.when(layer == n_layers - 1)
    def _():
        out_ref[...] = jnp.stack(
            [jnp.max(h_new[bb * L:(bb + 1) * L, :], axis=0, keepdims=True)
             for bb in range(batch_tile)],
            axis=0,
        )


def protein_cnn_forward(protein, params, *, n_layers, kernel_size, batch_tile=None):
    """protein: [B, L, P] float32 -> [B, 1, H] float32."""
    B, L, P = protein.shape
    H = params["w_fc"].shape[1]
    K = kernel_size

    if batch_tile is None:
        batch_tile = B                      # tiny batches: one block for the whole batch
    assert B % batch_tile == 0, "batch must be divisible by batch_tile"
    assert batch_tile == B or (batch_tile * L) % 8 == 0, \
        "partial batch blocks need batch_tile*L to be a multiple of 8"

    # Pre-pack conv weights: (layer, K, H, H) a-half + gate-half -> (layer, K*H, 2H).
    w_cat = jnp.concatenate([params["w_conv_a"], params["w_conv_g"]], axis=-1)
    w_im2col = w_cat.reshape(n_layers, K * H, 2 * H)
    b_cat = jnp.concatenate([params["b_conv_a"], params["b_conv_g"]], axis=-1)  # (layer, 1, 2H)

    x2d = protein.reshape(B * L, P)

    kernel = functools.partial(
        _cnn_kernel,
        n_layers=n_layers, kernel_size=K, seq_len=L, hid_dim=H,
        batch_tile=batch_tile,
    )

    return pl.pallas_call(
        kernel,
        out_shape=jax.ShapeDtypeStruct((B, 1, H), jnp.float32),
        grid=(B // batch_tile, n_layers),
        in_specs=[
            pl.BlockSpec((batch_tile * L, P), lambda b, l: (b, 0)),       # protein rows
            pl.BlockSpec((P, H), lambda b, l: (0, 0)),                    # w_fc (resident)
            pl.BlockSpec((1, H), lambda b, l: (0, 0)),                    # b_fc (resident)
            pl.BlockSpec((1, K * H, 2 * H), lambda b, l: (l, 0, 0)),      # per-layer conv weight
            pl.BlockSpec((1, 1, 2 * H), lambda b, l: (l, 0, 0)),          # per-layer conv bias
        ],
        out_specs=pl.BlockSpec((batch_tile, 1, H), lambda b, l: (b, 0, 0)),
        scratch_shapes=[pltpu.VMEM((batch_tile * L, H), jnp.float32)],    # carried h
        compiler_params=pltpu.CompilerParams(
            dimension_semantics=("parallel", "arbitrary"),
            vmem_limit_bytes=32 * 1024 * 1024,
        ),
    )(x2d, params["w_fc"], params["b_fc"], w_im2col, b_cat)


def init_params(key, protein_dim, hid_dim, n_layers, kernel_size):
    """Deterministic synthetic parameters (shapes match nn.Linear / nn.Conv1d)."""
    ks = jax.random.split(key, 6)
    # fc: Linear(protein_dim, hid_dim); stored as (in, out) for x @ W
    w_fc = 0.1 * jax.random.normal(ks[0], (protein_dim, hid_dim), jnp.float32)
    b_fc = 0.1 * jax.random.normal(ks[1], (1, hid_dim), jnp.float32)
    # Conv1d(hid_dim, 2*hid_dim, k): weights stored as (layer, k, in_ch, out_ch),
    # pre-split into the two GLU halves (first H out-channels -> a, last H -> gate).
    w_conv_a = 0.1 * jax.random.normal(ks[2], (n_layers, kernel_size, hid_dim, hid_dim), jnp.float32)
    b_conv_a = 0.1 * jax.random.normal(ks[3], (n_layers, 1, hid_dim), jnp.float32)
    w_conv_g = 0.1 * jax.random.normal(ks[4], (n_layers, kernel_size, hid_dim, hid_dim), jnp.float32)
    b_conv_g = 0.1 * jax.random.normal(ks[5], (n_layers, 1, hid_dim), jnp.float32)
    return dict(w_fc=w_fc, b_fc=b_fc,
                w_conv_a=w_conv_a, b_conv_a=b_conv_a,
                w_conv_g=w_conv_g, b_conv_g=b_conv_g)


def reference_forward(protein, params, *, n_layers, kernel_size):
    """Pure-JAX reference mirroring the PyTorch forward (for validation)."""
    pad = (kernel_size - 1) // 2
    B, L, P = protein.shape
    H = params["w_fc"].shape[1]
    h = protein @ params["w_fc"] + params["b_fc"]                # [B, L, H]
    for i in range(n_layers):
        padded = jnp.pad(h, ((0, 0), (pad, pad), (0, 0)))
        a = jnp.broadcast_to(params["b_conv_a"][i], (B, L, H))
        g = jnp.broadcast_to(params["b_conv_g"][i], (B, L, H))
        for k in range(kernel_size):
            tap = padded[:, k:k + L, :]
            a = a + tap @ params["w_conv_a"][i, k]
            g = g + tap @ params["w_conv_g"][i, k]
        h = (a * jax.nn.sigmoid(g) + h) * SQRT_HALF
    return jnp.max(h, axis=1, keepdims=True)                     # [B, 1, H]


if __name__ == "__main__":
    protein_dim = 32
    hid_dim = 32
    n_layers = 3
    kernel_size = 3
    B, L = 2, 8

    key = jax.random.PRNGKey(0)
    k_x, k_p = jax.random.split(key)
    protein = jax.random.normal(k_x, (B, L, protein_dim), jnp.float32)
    params = init_params(k_p, protein_dim, hid_dim, n_layers, kernel_size)

    out = protein_cnn_forward(protein, params,
                              n_layers=n_layers, kernel_size=kernel_size)
    out = jax.block_until_ready(out)

    ref = reference_forward(protein, params,
                            n_layers=n_layers, kernel_size=kernel_size)
    assert out.shape == (B, 1, hid_dim), out.shape
    assert jnp.allclose(out, ref, atol=5e-4, rtol=5e-4), "mismatch vs reference"

    print("KERNEL_OK")
</pallas_src>

<mosaic_0001>
module attributes {stable_mosaic.version = 11 : i64} {
  func.func @_cnn_kernel(%arg0: i32, %arg1: i32, %arg2: memref<16x32xf32, #tpu.memory_space<vmem>>, %arg3: memref<32x32xf32, #tpu.memory_space<vmem>>, %arg4: memref<1x32xf32, #tpu.memory_space<vmem>>, %arg5: memref<1x96x64xf32, #tpu.memory_space<vmem>>, %arg6: memref<1x1x64xf32, #tpu.memory_space<vmem>>, %arg7: memref<2x1x32xf32, #tpu.memory_space<vmem>>, %arg8: memref<16x32xf32, #tpu.memory_space<vmem>>) attributes {dimension_semantics = [#tpu.dimension_semantics<parallel>, #tpu.dimension_semantics<arbitrary>], iteration_bounds = array<i64: 1, 3>, scalar_prefetch = 0 : i64, scratch_operands = 1 : i64, tpu.core_type = #tpu.core_type<tc>, window_params = [{transform_indices = @transform_0, window_bounds = array<i64: 16, 32>}, {pipeline_mode = #tpu.pipeline_mode<synchronous>, transform_indices = @transform_1, window_bounds = array<i64: 32, 32>}, {pipeline_mode = #tpu.pipeline_mode<synchronous>, transform_indices = @transform_2, window_bounds = array<i64: 1, 32>}, {transform_indices = @transform_3, window_bounds = array<i64: 1, 96, 64>}, {transform_indices = @transform_4, window_bounds = array<i64: 1, 1, 64>}, {transform_indices = @transform_5, window_bounds = array<i64: 2, 1, 32>}]} {
    %c0_i32 = arith.constant 0 : i32
    %0 = arith.cmpi eq, %arg1, %c0_i32 : i32
    %1 = arith.extui %0 : i1 to i32
    %c0_i32_0 = arith.constant 0 : i32
    %2 = arith.cmpi ne, %1, %c0_i32_0 : i32
    scf.if %2 {
      %c0_25 = arith.constant 0 : index
      %c0_26 = arith.constant 0 : index
      %64 = vector.load %arg2[%c0_25, %c0_26] : memref<16x32xf32, #tpu.memory_space<vmem>>, vector<16x32xf32>
      %c0_27 = arith.constant 0 : index
      %c0_28 = arith.constant 0 : index
      %65 = vector.load %arg3[%c0_27, %c0_28] : memref<32x32xf32, #tpu.memory_space<vmem>>, vector<32x32xf32>
      %cst_29 = arith.constant dense<0.000000e+00> : vector<16x32xf32>
      %66 = tpu.matmul %64, %65, %cst_29 {dimension_numbers = #tpu.dot_dimension_numbers<[1], [0], [0], [1], [0, 0, 1, 1], [], []>} : vector<16x32xf32>, vector<32x32xf32>, vector<16x32xf32> -> vector<16x32xf32>
      %c0_30 = arith.constant 0 : index
      %c0_31 = arith.constant 0 : index
      %67 = vector.load %arg4[%c0_30, %c0_31] : memref<1x32xf32, #tpu.memory_space<vmem>>, vector<1x32xf32>
      %68 = vector.broadcast %67 : vector<1x32xf32> to vector<16x32xf32>
      %69 = arith.addf %66, %68 : vector<16x32xf32>
      %c0_32 = arith.constant 0 : index
      %c0_33 = arith.constant 0 : index
      %70 = vector.load %arg8[%c0_32, %c0_33] : memref<16x32xf32, #tpu.memory_space<vmem>>, vector<16x32xf32>
      tpu.vector_store %arg8[%c0_32, %c0_33], %69 {strides = array<i32>} : memref<16x32xf32, #tpu.memory_space<vmem>>, vector<16x32xf32>,
    } else {
    }
    %c0 = arith.constant 0 : index
    %c0_1 = arith.constant 0 : index
    %3 = vector.load %arg8[%c0, %c0_1] : memref<16x32xf32, #tpu.memory_space<vmem>>, vector<16x32xf32>
    %4 = tpu.iota {dimensions = array<i32: 0>} : vector<16x32xi32>
    %c8_i32 = arith.constant 8 : i32
    %c0_i32_2 = arith.constant 0 : i32
    %5 = arith.cmpi eq, %c8_i32, %c0_i32_2 : i32
    %c1_i32 = arith.constant 1 : i32
    %6 = arith.select %5, %c1_i32, %c8_i32 : i32
    %7 = vector.broadcast %6 : i32 to vector<16x32xi32>
    %8 = arith.remsi %4, %7 : vector<16x32xi32>
    %c0_i32_3 = arith.constant 0 : i32
    %9 = vector.broadcast %c0_i32_3 : i32 to vector<16x32xi32>
    %10 = arith.cmpi ne, %8, %9 : vector<16x32xi32>
    %c0_i32_4 = arith.constant 0 : i32
    %11 = vector.broadcast %c0_i32_4 : i32 to vector<16x32xi32>
    %12 = arith.cmpi slt, %8, %11 : vector<16x32xi32>
    %c0_i32_5 = arith.constant 0 : i32
    %13 = arith.cmpi slt, %6, %c0_i32_5 : i32
    %14 = vector.broadcast %13 : i1 to vector<16x32xi1>
    %15 = vector.broadcast %14 : vector<16x32xi1> to vector<16x32xi1>
    %16 = arith.xori %12, %15 : vector<16x32xi1>
    %17 = arith.andi %16, %10 : vector<16x32xi1>
    %18 = vector.broadcast %6 : i32 to vector<16x32xi32>
    %19 = arith.addi %8, %18 : vector<16x32xi32>
    %20 = arith.select %17, %19, %8 : vector<16x32xi1>, vector<16x32xi32>
    %c1_i32_6 = arith.constant 1 : i32
    %21 = tpu.dynamic_rotate %3 by %c1_i32_6 dim 0 : vector<16x32xf32>, i32 -> vector<16x32xf32>
    %c1_i32_7 = arith.constant 1 : i32
    %22 = vector.broadcast %c1_i32_7 : i32 to vector<16x32xi32>
    %23 = arith.subi %20, %22 : vector<16x32xi32>
    %c0_i32_8 = arith.constant 0 : i32
    %24 = vector.broadcast %c0_i32_8 : i32 to vector<16x32xi32>
    %25 = arith.cmpi sge, %23, %24 : vector<16x32xi32>
    %c8_i32_9 = arith.constant 8 : i32
    %26 = vector.broadcast %c8_i32_9 : i32 to vector<16x32xi32>
    %27 = arith.cmpi slt, %23, %26 : vector<16x32xi32>
    %28 = arith.andi %25, %27 : vector<16x32xi1>
    %cst = arith.constant 0.000000e+00 : f32
    %29 = vector.broadcast %cst : f32 to vector<16x32xf32>
    %30 = arith.select %28, %21, %29 : vector<16x32xi1>, vector<16x32xf32>
    %c15_i32 = arith.constant 15 : i32
    %31 = tpu.dynamic_rotate %3 by %c15_i32 dim 0 : vector<16x32xf32>, i32 -> vector<16x32xf32>
    %c-1_i32 = arith.constant -1 : i32
    %32 = vector.broadcast %c-1_i32 : i32 to vector<16x32xi32>
    %33 = arith.subi %20, %32 : vector<16x32xi32>
    %c0_i32_10 = arith.constant 0 : i32
    %34 = vector.broadcast %c0_i32_10 : i32 to vector<16x32xi32>
    %35 = arith.cmpi sge, %33, %34 : vector<16x32xi32>
    %c8_i32_11 = arith.constant 8 : i32
    %36 = vector.broadcast %c8_i32_11 : i32 to vector<16x32xi32>
    %37 = arith.cmpi slt, %33, %36 : vector<16x32xi32>
    %38 = arith.andi %35, %37 : vector<16x32xi1>
    %cst_12 = arith.constant 0.000000e+00 : f32
    %39 = vector.broadcast %cst_12 : f32 to vector<16x32xf32>
    %40 = arith.select %38, %31, %39 : vector<16x32xi1>, vector<16x32xf32>
    %41 = tpu.concatenate %30, %3, %40 in 1 : vector<16x32xf32>, vector<16x32xf32>, vector<16x32xf32> -> vector<16x96xf32>
    %c0_13 = arith.constant 0 : index
    %c0_14 = arith.constant 0 : index
    %c0_15 = arith.constant 0 : index
    %42 = vector.load %arg5[%c0_13, %c0_14, %c0_15] : memref<1x96x64xf32, #tpu.memory_space<vmem>>, vector<1x96x64xf32>
    %43 = vector.shape_cast %42 : vector<1x96x64xf32> to vector<96x64xf32>
    %cst_16 = arith.constant dense<0.000000e+00> : vector<16x64xf32>
    %44 = tpu.matmul %41, %43, %cst_16 {dimension_numbers = #tpu.dot_dimension_numbers<[1], [0], [0], [1], [0, 0, 1, 1], [], []>} : vector<16x96xf32>, vector<96x64xf32>, vector<16x64xf32> -> vector<16x64xf32>
    %c0_17 = arith.constant 0 : index
    %c0_18 = arith.constant 0 : index
    %c0_19 = arith.constant 0 : index
    %45 = vector.load %arg6[%c0_17, %c0_18, %c0_19] : memref<1x1x64xf32, #tpu.memory_space<vmem>>, vector<1x1x64xf32>
    %46 = vector.shape_cast %45 : vector<1x1x64xf32> to vector<1x64xf32>
    %47 = vector.broadcast %46 : vector<1x64xf32> to vector<16x64xf32>
    %48 = arith.addf %44, %47 : vector<16x64xf32>
    %49 = vector.extract_strided_slice %48 {offsets = [0, 0], sizes = [16, 32], strides = [1, 1]} : vector<16x64xf32> to vector<16x32xf32>
    %50 = vector.extract_strided_slice %48 {offsets = [0, 32], sizes = [16, 32], strides = [1, 1]} : vector<16x64xf32> to vector<16x32xf32>
    %51 = arith.negf %50 : vector<16x32xf32>
    %52 = math.exp %51 : vector<16x32xf32>
    %cst_20 = arith.constant 1.000000e+00 : f32
    %53 = vector.broadcast %cst_20 : f32 to vector<16x32xf32>
    %54 = arith.addf %53, %52 : vector<16x32xf32>
    %55 = arith.divf %53, %54 : vector<16x32xf32>
    %56 = arith.mulf %49, %55 : vector<16x32xf32>
    %57 = arith.addf %56, %3 : vector<16x32xf32>
    %cst_21 = arith.constant 0.707106769 : f32
    %58 = vector.broadcast %cst_21 : f32 to vector<16x32xf32>
    %59 = arith.mulf %57, %58 : vector<16x32xf32>
    %c0_22 = arith.constant 0 : index
    %c0_23 = arith.constant 0 : index
    %60 = vector.load %arg8[%c0_22, %c0_23] : memref<16x32xf32, #tpu.memory_space<vmem>>, vector<16x32xf32>
    tpu.vector_store %arg8[%c0_22, %c0_23], %59 {strides = array<i32>} : memref<16x32xf32, #tpu.memory_space<vmem>>, vector<16x32xf32>,
    %c2_i32 = arith.constant 2 : i32
    %61 = arith.cmpi eq, %arg1, %c2_i32 : i32
    %62 = arith.extui %61 : i1 to i32
    %c0_i32_24 = arith.constant 0 : i32
    %63 = arith.cmpi ne, %62, %c0_i32_24 : i32
    scf.if %63 {
      %64 = vector.extract_strided_slice %59 {offsets = [0, 0], sizes = [8, 32], strides = [1, 1]} : vector<16x32xf32> to vector<8x32xf32>
      %cst_25 = arith.constant dense<0xFF800000> : vector<32xf32>
      %65 = vector.multi_reduction <maximumf>, %64, %cst_25 [0] : vector<8x32xf32> to vector<32xf32>
      %66 = vector.shape_cast %65 : vector<32xf32> to vector<1x32xf32>
      %67 = vector.extract_strided_slice %59 {offsets = [8, 0], sizes = [8, 32], strides = [1, 1]} : vector<16x32xf32> to vector<8x32xf32>
      %cst_26 = arith.constant dense<0xFF800000> : vector<32xf32>
      %68 = vector.multi_reduction <maximumf>, %67, %cst_26 [0] : vector<8x32xf32> to vector<32xf32>
      %69 = vector.shape_cast %68 : vector<32xf32> to vector<1x32xf32>
      %70 = vector.shape_cast %66 : vector<1x32xf32> to vector<1x1x32xf32>
      %71 = vector.shape_cast %69 : vector<1x32xf32> to vector<1x1x32xf32>
      %72 = tpu.concatenate %70, %71 in 0 : vector<1x1x32xf32>, vector<1x1x32xf32> -> vector<2x1x32xf32>
      %c0_27 = arith.constant 0 : index
      %c0_28 = arith.constant 0 : index
      %c0_29 = arith.constant 0 : index
      %73 = vector.load %arg7[%c0_27, %c0_28, %c0_29] : memref<2x1x32xf32, #tpu.memory_space<vmem>>, vector<2x1x32xf32>
      tpu.vector_store %arg7[%c0_27, %c0_28, %c0_29], %72 {strides = array<i32>} : memref<2x1x32xf32, #tpu.memory_space<vmem>>, vector<2x1x32xf32>,
    } else {
    }
    return
  }
  func.func @transform_0(%arg0: i32, %arg1: i32) -> (i32, i32) {
    %c0_i32 = arith.constant 0 : i32
    %c0_i32_0 = arith.constant 0 : i32
    return %arg0, %c0_i32 : i32, i32
  }
  func.func @transform_1(%arg0: i32, %arg1: i32) -> (i32, i32) {
    %c0_i32 = arith.constant 0 : i32
    %c0_i32_0 = arith.constant 0 : i32
    %c0_i32_1 = arith.constant 0 : i32
    return %c0_i32, %c0_i32_0 : i32, i32
  }
  func.func @transform_2(%arg0: i32, %arg1: i32) -> (i32, i32) {
    %c0_i32 = arith.constant 0 : i32
    %c0_i32_0 = arith.constant 0 : i32
    %c0_i32_1 = arith.constant 0 : i32
    return %c0_i32, %c0_i32_0 : i32, i32
  }
  func.func @transform_3(%arg0: i32, %arg1: i32) -> (i32, i32, i32) {
    %c0_i32 = arith.constant 0 : i32
    %c0_i32_0 = arith.constant 0 : i32
    %c0_i32_1 = arith.constant 0 : i32
    return %arg1, %c0_i32, %c0_i32_0 : i32, i32, i32
  }
  func.func @transform_4(%arg0: i32, %arg1: i32) -> (i32, i32, i32) {
    %c0_i32 = arith.constant 0 : i32
    %c0_i32_0 = arith.constant 0 : i32
    %c0_i32_1 = arith.constant 0 : i32
    return %arg1, %c0_i32, %c0_i32_0 : i32, i32, i32
  }
  func.func @transform_5(%arg0: i32, %arg1: i32) -> (i32, i32, i32) {
    %c0_i32 = arith.constant 0 : i32
    %c0_i32_0 = arith.constant 0 : i32
    %c0_i32_1 = arith.constant 0 : i32
    return %arg0, %c0_i32, %c0_i32_0 : i32, i32, i32
  }
}

</mosaic_0001>

<bundles_post_ra>
// kernel: tpu_custom_call.1
= control target key start
LH: loop header
LB: loop body
LE: loop exit
PB: predicated region body
PF: predicated region fallthrough
CT: control target
= control target key end

     0   :  { %10 = vsyncpa [#allocation4], 0  ;;  %s932_s18 = smov 0   ;;  %s934_s19 = smov 0   ;;  %s1066_s0 = inlined_call_operand.vmem [shape: f32[16,32], index: 0, kind: input, shape index: {}]   ;;  %s1067_s1 = inlined_call_operand.vmem [shape: f32[32,32], index: 1, kind: input, shape index: {}]   ;;  %s1068_s2 = inlined_call_operand.vmem [shape: f32[1,32], index: 2, kind: input, shape index: {}]   ;;  %s1069_s3 = inlined_call_operand.vmem [shape: f32[3,96,64], index: 3, kind: input, shape index: {}]   ;;  %s1070_s4 = inlined_call_operand.vmem [shape: f32[3,1,64], index: 4, kind: input, shape index: {}]   ;;  %s1071_s5 = inlined_call_operand.hbm [shape: f32[2,1,32], index: 5, kind: output, shape index: {}]  }
   0x1   :  { %s936_s20 = smov 0  }
   0x2 LB: > { %s683_s21 = sadd.s32 4294967295, %s894_s20   ;;  %s25_s22 = sadd.s32 1, %s890_s19  ;;  %s894_s20 = sphi %s936_s20, %s16_s20   ;;  %s890_s19 = sphi %s934_s19, %s1074_s19   ;;  %s886_s18 = sphi %s932_s18, %s1073_s18  }
   0x3   : > { %p26_p0 = scmp.ge.s32.totalorder %s25_s22, 3  ;;  %p687_p1 = scmp.ge.s32.totalorder %s894_s20, 1 }
   0x4   : > { %p219_p2 = scmp.lt.s32.totalorder %s894_s20, 4 }
   0x5   : > { %s1076_s22 = smov (%p26_p0, %s25_s22), 0 }
   0x6   : > { %p220_p3 = pnand %p687_p1, %p219_p2 }
   0x7   : > { %p256_p4 = scmp.lt.s32.totalorder (!%p220_p3), %s886_s18, 2  ;;  %p689_p5 = scmp.ne.s32.totalorder (!%p220_p3), %s886_s18, 0 }
   0x8   : > { %223 = sbr.rel (%p220_p3) target bundleno = 776 (0x308), region = 40 }
   0xf   : > { %s955_s23 = scalar_select %p256_p4, %s886_s18, 2 }
  0x10   : > { %268 = sbr.rel (%p689_p5) target bundleno = 243 (0xf3), region = 44  ;;  %v271_v0 = vld [vmem:[%s1067_s1] sm:$0xff] (!%p689_p5)  ;;  %v272_v1 = vld [vmem:[%s1067_s1 + $0x8] sm:$0xff] (!%p689_p5)  ;;  %v273_v2 = vld [vmem:[%s1067_s1 + $0x10] sm:$0xff] (!%p689_p5)  ;;  %vm282_vm0 = vcmask (!%p689_p5), 261120  }
  0x11   : > { %s797_s24 = smul.u32 96, %s955_s23  ;;  %s263_s27 = scalar_lea.vmem %s1070_s4, %s955_s23  ;;  %v765_v3 = vpack.c.bf16 (!%p689_p5), %v272_v1, %v271_v0  ;;  %v274_v4 = vld [vmem:[%s1067_s1 + $0x18] sm:$0xff] (!%p689_p5)  ;;  %v269_v5 = vld [vmem:[%s1066_s0] sm:$0xff] (!%p689_p5)  ;;  %v270_v7 = vld [vmem:[%s1066_s0 + $0x8] sm:$0xff] (!%p689_p5) }
  0x12   : > { %v769_v6 = vpack.c.bf16 (!%p689_p5), %v274_v4, %v273_v2  ;;  %735 = vmatprep.mubr.msk.f32.mxu0 (!%p689_p5), %vm282_vm0, %v269_v5  ;;  %v690_v8 = vld [vmem:[%s1068_s2] ss:$0 sm:$0xff] (!%p689_p5) }
  0x13   : > { %s965_s30 = scalar_lea.vmem %s1069_s3, %s797_s24  ;;  %766 = vmatprep.subr.bf16.mxu0 (!%p689_p5), %v765_v3 }
  0x14   : > { %768 = vmatpush3.bf16.msra.mxu0 (!%p689_p5), %v765_v3 }
  0x15   : > { %770 = vmatprep.subr.bf16.mxu0 (!%p689_p5), %v769_v6 }
  0x18   : > { %772 = vmatpush3.bf16.msra.mxu0 %v769_v6 }
  0x1b   : > { %736 = vmatmul.mubr.msk.f32.vlgmr.msra.gmra.mrb[0].mxu0 %vm282_vm0, %v270_v7 }
  0xee   : > { %v737_v9 = vpop.f32.mrb[0].mxu0 }
  0xef   : > { %v361_v10 = vadd.f32 %v737_v9, %v690_v8  ;;  %v355_v11 = vpop.f32.mrb[1].mxu0 }
  0xf0   : > { %v356_v12 = vadd.f32 %v690_v8, %v355_v11 }
  0xf1   : > { %365 = vst.msk [vmem:[#allocation2 + $0x8] sm:$0xff] %vm282_vm0, %v361_v10 }
  0xf2   : > { %364 = vst.msk [vmem:[#allocation2] sm:$0xff] %vm282_vm0, %v356_v12 }
  0xf3 PF: > { %v368_v15 = vlaneseq  ;;  %v447_v16 = vld [vmem:[%s965_s30] sm:$0xff]  ;;  %s896_s26 = smov 32   ;;  %v448_v19 = vld [vmem:[%s965_s30 + $0x8] sm:$0xff]  ;;  %v449_v20 = vld [vmem:[%s965_s30 + $0x10] sm:$0xff]  ;;  %s897_s28 = smov 64   ;;  %vm441_vm7 = vcmask 261120  }
  0xf4   : > { %v450_v21 = vld [vmem:[%s965_s30 + $0x18] sm:$0xff]  ;;  %v773_v24 = vpack.c.bf16 %v448_v19, %v447_v16  ;;  %v451_v26 = vld [vmem:[%s965_s30 + $0x20] sm:$0xff]  ;;  %v452_v27 = vld [vmem:[%s965_s30 + $0x28] sm:$0xff]  ;;  %vm444_vm8 = vcmask 523264   ;;  %vm466_vm9 = vcmask 785408   ;;  %s898_s6 = smov 96  }
  0xf5   : > { %v369_v23 = vshrl.u32 %v368_v15, 7  ;;  %v777_v25 = vpack.c.bf16 %v450_v21, %v449_v20  ;;  %v781_v32 = vpack.c.bf16 %v452_v27, %v451_v26  ;;  %v453_v38 = vld [vmem:[%s965_s30 + $0x30] sm:$0xff]  ;;  %v454_v39 = vld [vmem:[%s965_s30 + $0x38] sm:$0xff]  ;;  %v455_v47 = vld [vmem:[%s965_s30 + $0x40] sm:$0xff]  ;;  %p702_p6 = scmp.ne.s32.totalorder %s886_s18, 2 }
  0xf6   : > { %774 = vmatprep.subr.bf16.mxu0 %v773_v24  ;;  %v785_v45 = vpack.c.bf16 %v454_v39, %v453_v38  ;;  %v456_v48 = vld [vmem:[%s965_s30 + $0x48] sm:$0xff]  ;;  %v457_v51 = vld [vmem:[%s965_s30 + $0x50] sm:$0xff]  ;;  %v458_v52 = vld [vmem:[%s965_s30 + $0x58] sm:$0xff]  ;;  %vm594_vm10 = vcmask (!%p702_p6), 253952  }
  0xf7   : > { %v375_v29 = vand.u32 7, %v369_v23  ;;  %vm412_vm1 = vcmp.lt.s32.totalorder %v369_v23, 7  ;;  %v370_v30 = vadd.s32 8, %v369_v23  ;;  %776 = vmatpush3.bf16.msra.mxu0 %v773_v24  ;;  %vm397_vm2 = vcmp.lt.s32.totalorder %v369_v23, 1  ;;  %v697_v62 = vld [vmem:[%s263_s27] ss:$0 sm:$0xff] }
  0xf8   : > { %v995_v14 = vld [vmem:[#allocation2 + $0x8] sm:$0xff]  ;;  %778 = vmatprep.subr.bf16.mxu0 %v777_v25  ;;  %v789_v50 = vpack.c.bf16 %v456_v48, %v455_v47  ;;  %v793_v53 = vpack.c.bf16 %v458_v52, %v457_v51 }
  0xf9   : > { %v993_v13 = vld [vmem:[#allocation2] sm:$0xff]  ;;  %v411_v18 = vrot.slane %v995_v14, 1  ;;  %v396_v22 = vrot.slane %v995_v14, 7  ;;  %v695_v33 = vadd.s32 1, %v375_v29  ;;  %v382_v34 = vand.u32 7, %v370_v30 }
  0xfa   : > { %427 = vrot.lane.b32.xlu0 %v993_v13, %s896_s26  ;;  %v410_v17 = vrot.slane %v993_v13, 1  ;;  %v395_v28 = vrot.slane %v993_v13, 7  ;;  %v693_v35 = vadd.s32 4294967295, %v375_v29 }
  0xfb   : > { %vm419_vm3 = vcmp.lt.s32.totalorder %v695_v33, 8  ;;  %v696_v41 = vadd.s32 1, %v382_v34  ;;  %v694_v42 = vadd.s32 4294967295, %v382_v34  ;;  %780 = vmatpush3.bf16.msra.mxu0 %v777_v25 }
  0xfc   : > { %v413_v31 = vsel %vm412_vm1, %v410_v17, %v411_v18  ;;  %v399_v36 = vsel %vm397_vm2, %v396_v22, %v395_v28  ;;  %v414_v37 = vsel %vm412_vm1, %v411_v18, %v410_v17  ;;  %v398_v40 = vsel %vm397_vm2, %v395_v28, %v396_v22  ;;  %782 = vmatprep.subr.bf16.mxu0 %v781_v32 }
  0xfd   : > { %vm402_vm4 = vcmp.ge.s32.totalorder %v693_v35, 0  ;;  %v423_v43 = vsel %vm419_vm3, %v413_v31, 0.0  ;;  %vm420_vm5 = vcmp.lt.s32.totalorder %v696_v41, 8  ;;  %vm403_vm6 = vcmp.ge.s32.totalorder %v694_v42, 0 }
  0xfe   : > { %429 = vrot.lane.b32.xlu0 %v995_v14, %s896_s26  ;;  %v408_v44 = vsel %vm402_vm4, %v399_v36, 0.0  ;;  %435 = vrot.lane.b32.xlu1 %v423_v43, %s897_s28  ;;  %v424_v46 = vsel %vm420_vm5, %v414_v37, 0.0  ;;  %v409_v49 = vsel %vm403_vm6, %v398_v40, 0.0 }
  0xff   : > { %784 = vmatpush3.bf16.msra.mxu0 %v781_v32 }
 0x100   : > { %786 = vmatprep.subr.bf16.mxu0 %v785_v45 }
 0x102   : > { %437 = vrot.lane.b32.xlu1 %v424_v46, %s897_s28 }
 0x103   : > { %788 = vmatpush3.bf16.msra.mxu0 %v785_v45 }
 0x104   : > { %790 = vmatprep.subr.bf16.mxu0 %v789_v50 }
 0x107   : > { %792 = vmatpush3.bf16.msra.mxu0 %v789_v50 }
 0x108   : > { %794 = vmatprep.subr.bf16.mxu0 %v793_v53 }
 0x10b   : > { %796 = vmatpush3.bf16.msra.mxu0 %v793_v53 }
 0x16c   : > { %v428_v54 = vpop.permute.xlu0 %427 }
 0x16d   : > { %v442_v55 = vsel %vm441_vm7, %v408_v44, %v428_v54 }
 0x170   : > { %v430_v56 = vpop.permute.xlu0 %429  ;;  %v436_v57 = vpop.permute.xlu1 %435 }
 0x171   : > { %v445_v58 = vsel %vm444_vm8, %v442_v55, %v436_v57  ;;  %v443_v59 = vsel %vm441_vm7, %v409_v49, %v430_v56 }
 0x172   : > { %762 = vmatprep.mubr.msk.f32.mxu0 %vm466_vm9, %v445_v58 }
 0x174   : > { %v438_v60 = vpop.permute.xlu1 %437 }
 0x175   : > { %v446_v61 = vsel %vm444_vm8, %v443_v59, %v438_v60 }
 0x176   : > { %763 = vmatmul.mubr.msk.f32.vlgmr.msra.gmra.mrb[0].mxu0 %vm466_vm9, %v446_v61 }
 0x249   : > { %v764_v63 = vpop.f32.mrb[0].mxu0 }
 0x24a   : > { %v545_v0 = vadd.f32 %v764_v63, %v697_v62  ;;  %v539_v1 = vpop.f32.mrb[1].mxu0 }
 0x24b   : > { %v540_v2 = vadd.f32 %v697_v62, %v539_v1 }
 0x24c   : > { %v701_v3 = vmul.f32 -1.442695, %v545_v0 }
 0x24d   : > { %v700_v4 = vmul.f32 -1.442695, %v540_v2 }
 0x24e   : > { %834 = vpow2.f32 %v701_v3 }
 0x24f   : > { %836 = vpow2.f32 %v700_v4 }
 0x258   : > { %v835_v5 = vpop.eup %834 }
 0x259   : > { %v837_v6 = vpop.eup %836  ;;  %v555_v7 = vadd.f32 1.0, %v835_v5 }
 0x25a   : > { %v554_v8 = vadd.f32 1.0, %v837_v6 }
 0x25b   : > { %838 = vrcp.f32 %v555_v7 }
 0x25c   : > { %840 = vrcp.f32 %v554_v8 }
 0x265   : > { %v839_v9 = vpop.eup %838 }
 0x266   : > { %v841_v10 = vpop.eup %840  ;;  %564 = vrot.lane.b32.xlu1 %v839_v9, %s898_s6 }
 0x267   : > { %562 = vrot.lane.b32.xlu0 %v841_v10, %s898_s6 }
 0x2d8   : > { %v565_v11 = vpop.permute.xlu1 %564 }
 0x2d9   : > { %v569_v12 = vmul.f32 %v565_v11, %v545_v0  ;;  %v563_v15 = vpop.permute.xlu0 %562 }
 0x2da   : > { %v568_v16 = vmul.f32 %v563_v15, %v540_v2  ;;  %579 = sbr.rel (%p702_p6) target bundleno = 750 (0x2ee), region = 48 }
 0x2db   : > { %v571_v17 = vadd.f32 %v569_v12, %v995_v14 }
 0x2dc   : > { %v570_v18 = vadd.f32 %v568_v16, %v993_v13 }
 0x2dd   : > { %v573_v19 = vmul.f32 0.70710677, %v571_v17 }
 0x2de   : > { %v572_v20 = vmul.f32 0.70710677, %v570_v18 }
 0x2df   : > { %575 = vst.msk [vmem:[#allocation2 + $0x8] sm:$0xff] %vm441_vm7, %v573_v19  ;;  %v587_v22 = vsel (!%p702_p6), %vm441_vm7, %v573_v19, -inf }
 0x2e0   : > { %574 = vst.msk [vmem:[#allocation2] sm:$0xff] %vm441_vm7, %v572_v20  ;;  %v580_v21 = vsel (!%p702_p6), %vm441_vm7, %v572_v20, -inf  ;;  %v588_v24 = vrot.slane (!%p702_p6), %v587_v22, 4 }
 0x2e1   : > { %v581_v23 = vrot.slane %v580_v21, 4 }
 0x2e2   : > { %v589_v26 = vmax.f32 %v587_v22, %v588_v24 }
 0x2e3   : > { %v582_v25 = vmax.f32 %v580_v21, %v581_v23 }
 0x2e4   : > { %v590_v27 = vrot.slane %v589_v26, 2 }
 0x2e5   : > { %v583_v14 = vrot.slane %v582_v25, 2 }
 0x2e6   : > { %v591_v28 = vmax.f32 %v589_v26, %v590_v27 }
 0x2e7   : > { %v584_v13 = vmax.f32 %v582_v25, %v583_v14 }
 0x2e8   : > { %v592_v30 = vrot.slane %v591_v28, 1 }
 0x2e9   : > { %v585_v29 = vrot.slane %v584_v13, 1 }
 0x2ea   : > { %v593_v32 = vmax.f32 %v591_v28, %v592_v30 }
 0x2eb   : > { %v586_v31 = vmax.f32 %v584_v13, %v585_v29 }
 0x2ec   : > { %596 = vst.msk [vmem:[#allocation3 + $0x1] sm:$0x1] %vm594_vm10, %v593_v32 }
 0x2ed   : > { %595 = vst.msk [vmem:[#allocation3] sm:$0x1] %vm594_vm10, %v586_v31 }
 0x2ee PF: > { %p1031_p7 = scmp.eq.s32.totalorder %s683_s21, 2  ;;  %s899_s23 = smov [#allocation3]  }
 0x2ef   : > { %s606_s27 = sshll.u32 %s899_s23, 4  ;;  %s607_s27 = int_to_ptr.vmem [resolvable:$true] %s606_s27 }
 0x2f0   : > { %s842_s7 = scalar_lea.vmem %s607_s27, 32  ;;  %p849_p11 = scmp.lt.s32.totalorder %s607_s27, %s607_s27 }
 0x2f1   : > { %p843_p8 = scmp.ne.s32.totalorder %s607_s27, %s842_s7  ;;  %p850_p12 = scmp.lt.s32.totalorder %s842_s7, %s842_s7 }
 0x2f3   : > { %p844_p9 = pnand %p843_p8, %p1031_p7  ;;  %p851_p13 = por %p850_p12, %p849_p11 }
 0x2f5   : > { %p845_p10 = pneg %p844_p9 }
 0x2f7   : > { %p852_p0 = pnand %p851_p13, %p845_p10 }
 0x2f9   : > { %855 = shalt.err (!%p852_p0)
}
 0x2fa   : > { %s856_s21 = scalar_lea.hbm %s1071_s5, 32 }
 0x2fb   : > { %p857_p1 = scmp.ne.s32.totalorder %s1071_s5, %s856_s21  ;;  %p862_p4 = scmp.lt.u32.totalorder %s856_s21, %s1071_s5 }
 0x2fd   : > { %p858_p2 = pnand %p857_p1, %p1031_p7 }
 0x2ff   : > { %p859_p3 = pneg %p858_p2 }
 0x301   : > { %p864_p5 = pnand %p862_p4, %p859_p3 }
 0x303   : > { %867 = shalt.err (!%p864_p5)
}
 0x304   : > { %s900_s14 = smov 16   ;;  %s901_s15 = smov 1  }
 0x305   : > { %799 = dma.vmem_to_hbm [thread:$0]  (%p1031_p7), %s607_s27, 32, %s1071_s5, [#allocation4], %s900_s14, %s900_s14, %s901_s15  }
 0x306   : > { %881 = dma.done.wait (%p1031_p7), [#allocation4], 32  }
 0x307   : > { %883 = vsyncadd (%p1031_p7), [#allocation4], 4294967264 }
 0x308 PF: > { %s16_s20 = sadd.s32 1, %s894_s20   ;;  %s1073_s18 = smov %s890_s19 }
 0x309   : > { %p13_p6 = scmp.ge.s32.totalorder %s16_s20, 5   ;;  %s1074_s19 = smov %s1076_s22 }
 0x30b   :  { %15 = sbr.rel (!%p13_p6) target bundleno = 2 (0x2), region = 82 }
 0x312   :  { %622 = vsyncpa [#allocation4], 1 }
 0x313   :  { %624 = vsyncpa [#allocation4 + $0x1], 1 }

</bundles_post_ra>
